<compile_context>
chip_gen: v7x
topology: tpu7x:2x2x1
jax: 0.10.0
libtpu: 0.0.40
codegen_flags: <defaults>
</compile_context>

<pallas_src>
import jax
import jax.numpy as jnp
import numpy as np
from jax import lax
from jax.experimental import pallas as pl
from jax.experimental.pallas import tpu as pltpu


def _fused_kernel(x_ref, o_ref):
    # x_ref: (B, B, N)  -- whole x1, VMEM-resident
    # o_ref: (B, N, N)  -- o[i, m, n] = sum_k x1[k, i, m] * x1[i, k, n]
    x = x_ref[...]                        # (B, B, N)
    xt = jnp.transpose(x, (1, 0, 2))      # xt[i, k, :] = x1[k, i, :]  (sublane permute, XLU)
    # Single batched MXU matmul: batch dim i (0), contract dim k (1).
    # result[i, m, n] = sum_k xt[i, k, m] * x[i, k, n]
    o_ref[...] = lax.dot_general(
        xt, x,
        dimension_numbers=(((1,), (1,)), ((0,), (0,))),
        preferred_element_type=jnp.float32,
    ).astype(o_ref.dtype)


def _cost(B, N, itemsize):
    return pl.CostEstimate(
        flops=2 * B * B * N * N,
        transcendentals=0,
        bytes_accessed=(B * B * N + B * N * N) * itemsize,
    )


@jax.jit
def _permute_matmul_fused(x1):
    B, _, N = x1.shape
    return pl.pallas_call(
        _fused_kernel,
        out_shape=jax.ShapeDtypeStruct((B, N, N), x1.dtype),
        grid=(1,),  # single step: whole input/output VMEM-resident
        in_specs=[pl.BlockSpec((B, B, N), lambda g: (0, 0, 0))],
        out_specs=pl.BlockSpec((B, N, N), lambda g: (0, 0, 0)),
        compiler_params=pltpu.CompilerParams(dimension_semantics=("arbitrary",)),
        cost_estimate=_cost(B, N, x1.dtype.itemsize),
    )(x1)


def permute_matmul(x1, x2=None):
    # x2 is accepted for signature parity with the torch module but is unused
    # (v2 = bmm(d, e^T) in the torch forward is dead code).
    B0, B1, _ = x1.shape
    assert B0 == B1, "torch semantics require P0 == P1 for the matmul to be valid"
    # No per-call sync, no fallback dispatch: return the un-synced jitted result.
    return _permute_matmul_fused(x1)


if __name__ == "__main__":
    key = jax.random.PRNGKey(0)
    k1, k2 = jax.random.split(key)
    B, N = 8, 128  # small, MXU/VPU-friendly shape with P0 == P1 == B
    x1 = jax.random.normal(k1, (B, B, N), dtype=jnp.float32)
    x2 = jax.random.normal(k2, (B, B, N), dtype=jnp.float32)  # unused by forward

    out = jax.block_until_ready(permute_matmul(x1, x2))

    # Pure-JAX reference mirroring the torch permute/matmul chain.
    a = jnp.transpose(x1, (0, 2, 1))
    c = jnp.transpose(x1, (1, 2, 0))
    v1 = jnp.transpose(c, (0, 2, 1))
    v3 = jnp.matmul(a, v1)
    v4 = jnp.transpose(v3, (0, 2, 1))
    assert out.shape == v4.shape and out.dtype == v4.dtype
    np.testing.assert_allclose(np.asarray(out), np.asarray(v4), rtol=1e-5, atol=1e-5)

    print("KERNEL_OK")
</pallas_src>

<mosaic_0001>
module attributes {stable_mosaic.version = 11 : i64} {
  func.func @_fused_kernel(%arg0: i32, %arg1: memref<8x8x128xf32, #tpu.memory_space<vmem>>, %arg2: memref<8x128x128xf32, #tpu.memory_space<vmem>>) attributes {dimension_semantics = [#tpu.dimension_semantics<arbitrary>], iteration_bounds = array<i64: 1>, scalar_prefetch = 0 : i64, scratch_operands = 0 : i64, tpu.core_type = #tpu.core_type<tc>, window_params = [{pipeline_mode = #tpu.pipeline_mode<synchronous>, transform_indices = @transform_0, window_bounds = array<i64: 8, 8, 128>}, {pipeline_mode = #tpu.pipeline_mode<synchronous>, transform_indices = @transform_1, window_bounds = array<i64: 8, 128, 128>}]} {
    %c0 = arith.constant 0 : index
    %c0_0 = arith.constant 0 : index
    %c0_1 = arith.constant 0 : index
    %0 = vector.load %arg1[%c0, %c0_0, %c0_1] : memref<8x8x128xf32, #tpu.memory_space<vmem>>, vector<8x8x128xf32>
    %1 = tpu.transpose %0, [1, 0, 2] : vector<8x8x128xf32> -> vector<8x8x128xf32>
    %cst = arith.constant dense<0.000000e+00> : vector<8x128x128xf32>
    %2 = tpu.matmul %1, %0, %cst {dimension_numbers = #tpu.dot_dimension_numbers<[1], [1], [2], [2], [0, 0, 0, 2, 1, 2], [0], [0]>} : vector<8x8x128xf32>, vector<8x8x128xf32>, vector<8x128x128xf32> -> vector<8x128x128xf32>
    %c0_2 = arith.constant 0 : index
    %c0_3 = arith.constant 0 : index
    %c0_4 = arith.constant 0 : index
    %3 = vector.load %arg2[%c0_2, %c0_3, %c0_4] : memref<8x128x128xf32, #tpu.memory_space<vmem>>, vector<8x128x128xf32>
    tpu.vector_store %arg2[%c0_2, %c0_3, %c0_4], %2 {strides = array<i32>} : memref<8x128x128xf32, #tpu.memory_space<vmem>>, vector<8x128x128xf32>,
    return
  }
  func.func @transform_0(%arg0: i32) -> (i32, i32, i32) {
    %c0_i32 = arith.constant 0 : i32
    %c0_i32_0 = arith.constant 0 : i32
    %c0_i32_1 = arith.constant 0 : i32
    %c0_i32_2 = arith.constant 0 : i32
    return %c0_i32, %c0_i32_0, %c0_i32_1 : i32, i32, i32
  }
  func.func @transform_1(%arg0: i32) -> (i32, i32, i32) {
    %c0_i32 = arith.constant 0 : i32
    %c0_i32_0 = arith.constant 0 : i32
    %c0_i32_1 = arith.constant 0 : i32
    %c0_i32_2 = arith.constant 0 : i32
    return %c0_i32, %c0_i32_0, %c0_i32_1 : i32, i32, i32
  }
}

</mosaic_0001>

<bundles_post_ra>
// kernel: _permute_matmul_fused.1
= control target key start
LH: loop header
LB: loop body
LE: loop exit
PB: predicated region body
PF: predicated region fallthrough
CT: control target
= control target key end

     0   :  { %6 = vsyncpa [#allocation3], 0  ;;  %s2864_s0 = inlined_call_operand.hbm [shape: f32[8,8,128], index: 0, kind: input, shape index: {}]   ;;  %s2865_s1 = inlined_call_operand.hbm [shape: f32[8,128,128], index: 1, kind: output, shape index: {}]  }
   0x1   :  { %7 = vsyncpa [#allocation4], 0  ;;  %s2648_s6 = smov [#allocation2]   ;;  %s2600_s10 = scalar_lea.hbm %s2864_s0, 1024 }
   0x2   :  { %s13_s7 = sshll.u32 %s2648_s6, 4  ;;  %p2601_p0 = scmp.ne.s32.totalorder %s2864_s0, %s2600_s10  ;;  %s14_s7 = int_to_ptr.vmem [resolvable:$true] %s13_s7 }
   0x3   :  { %p2604_p1 = scmp.lt.u32.totalorder %s2600_s10, %s2864_s0 }
   0x5   :  { %p2606_p2 = pnand %p2604_p1, %p2601_p0 }
   0x7   :  { %2609 = shalt.err (!%p2606_p2)
}
   0x8   :  { %s2610_s15 = scalar_lea.vmem %s14_s7, 1024  ;;  %p2615_p4 = scmp.lt.s32.totalorder %s14_s7, %s14_s7 }
   0x9   :  { %p2611_p3 = scmp.ne.s32.totalorder %s14_s7, %s2610_s15  ;;  %p2616_p5 = scmp.lt.s32.totalorder %s2610_s15, %s2610_s15 }
   0xb   :  { %p2617_p6 = por %p2616_p5, %p2615_p4 }
   0xd   :  { %p2618_p7 = pnand %p2617_p6, %p2611_p3 }
   0xf   :  { %2621 = shalt.err (!%p2618_p7)
}
  0x10   :  { %s2649_s16 = smov 128   ;;  %s2650_s17 = smov 8  }
  0x11   :  { %19 = dma.hbm_to_vmem [thread:$0]  %s2864_s0, 1024, %s14_s7, [#allocation3], %s2649_s16, %s2649_s16, %s2650_s17  }
  0x12   :  { %2644 = dma.done.wait [#allocation3], 1024  }
  0x13   :  { %2645 = vsyncadd [#allocation3], 4294966272  ;;  %v36_v0 = vlaneseq  ;;  %v2651_v1 = vmov 1983009808   ;;  %v2652_v3 = vmov 1934713408  }
  0x14   :  { %v34_v2 = vunpack.c.l.s4 %v2651_v1  ;;  %v98_v4 = vunpack.c.l.s4 %v2652_v3  ;;  %v23_v9 = vld [vmem:[#allocation2] sm:$0xff]  ;;  %v24_v10 = vld [vmem:[#allocation2 + $0x8] sm:$0xff]  ;;  %v2679_v11 = vld [vmem:[#allocation2 + $0x10] sm:$0xff]  ;;  %vm199_vm0 = vcmask 64512   ;;  %s2653_s0 = smov [#allocation5]  }
  0x15   :  { %v37_v5 = vshrl.u32 %v36_v0, 7  ;;  %v2681_v12 = vld [vmem:[#allocation2 + $0x18] sm:$0xff]  ;;  %v2683_v13 = vld [vmem:[#allocation2 + $0x20] sm:$0xff]  ;;  %v2685_v14 = vld [vmem:[#allocation2 + $0x28] sm:$0xff]  ;;  %v31_v15 = vcombine.low %v23_v9, %v2679_v11  ;;  %v32_v16 = vcombine.high %v23_v9, %v2679_v11  ;;  %2377 = vmatprep.subr.mxu0 %v23_v9  ;;  %2403 = vmatprep.subr.mxu1 %v24_v10  ;;  %s2101_s20 = sshll.u32 %s2653_s0, 4  ;;  %s2102_s20 = int_to_ptr.vmem [resolvable:$true] %s2101_s20 }
  0x16   :  { %v35_v6 = vunpack.c.0.s8 %v34_v2  ;;  %v99_v7 = vunpack.c.0.s8 %v98_v4  ;;  %v2689_v17 = vld [vmem:[#allocation2 + $0x30] sm:$0xff]  ;;  %v2691_v18 = vld [vmem:[#allocation2 + $0x38] sm:$0xff]  ;;  %v47_v19 = vcombine.low %v24_v10, %v2681_v12  ;;  %v48_v21 = vcombine.high %v24_v10, %v2681_v12  ;;  %2378 = vmatpush3.msra.mxu0 %v23_v9  ;;  %2404 = vmatpush3.msra.mxu1 %v24_v10  ;;  %s2622_s21 = scalar_lea.vmem %s2102_s20, 16384  ;;  %p2627_p9 = scmp.lt.s32.totalorder %s2102_s20, %s2102_s20 }
  0x17   :  { %v63_v23 = vcombine.low %v2683_v13, %v2689_v17  ;;  %v79_v24 = vcombine.low %v2685_v14, %v2691_v18  ;;  %2429 = vmatprep.subr.mxu0 %v2679_v11  ;;  %v64_v28 = vcombine.high %v2683_v13, %v2689_v17  ;;  %v80_v29 = vcombine.high %v2685_v14, %v2691_v18  ;;  %p2623_p8 = scmp.ne.s32.totalorder %s2102_s20, %s2622_s21  ;;  %p2628_p10 = scmp.lt.s32.totalorder %s2622_s21, %s2622_s21 }
  0x18   :  { %v38_v8 = vsub.s32 %v35_v6, %v37_v5  ;;  %v102_v20 = vsub.s32 %v99_v7, %v37_v5  ;;  %2455 = vmatprep.subr.mxu1 %v2681_v12 }
  0x19   :  { %p2629_p11 = por %p2628_p10, %p2627_p9 }
  0x1a   :  { %v39_v22 = vrot.slane %v31_v15, %v38_v8  ;;  %v46_v25 = vrot.slane %v32_v16, %v38_v8  ;;  %v55_v26 = vrot.slane %v47_v19, %v38_v8  ;;  %v62_v27 = vrot.slane %v48_v21, %v38_v8 }
  0x1b   :  { %v71_v30 = vrot.slane %v63_v23, %v38_v8  ;;  %v87_v31 = vrot.slane %v79_v24, %v38_v8  ;;  %v78_v34 = vrot.slane %v64_v28, %v38_v8  ;;  %v94_v35 = vrot.slane %v80_v29, %v38_v8  ;;  %p2630_p12 = pnand %p2629_p11, %p2623_p8 }
  0x1c   :  { %v96_v32 = vcombine.high %v39_v22, %v55_v26  ;;  %v95_v33 = vcombine.low %v39_v22, %v55_v26  ;;  %v111_v38 = vcombine.low %v46_v25, %v62_v27  ;;  %v112_v52 = vcombine.high %v46_v25, %v62_v27 }
  0x1d   :  { %v128_v36 = vcombine.high %v71_v30, %v87_v31  ;;  %v127_v37 = vcombine.low %v71_v30, %v87_v31  ;;  %v143_v41 = vcombine.low %v78_v34, %v94_v35  ;;  %v144_v53 = vcombine.high %v78_v34, %v94_v35 }
  0x1e   :  { %v110_v39 = vrot.slane %v96_v32, %v102_v20  ;;  %v103_v40 = vrot.slane %v95_v33, %v102_v20  ;;  %v119_v44 = vrot.slane %v111_v38, %v102_v20  ;;  %v126_v54 = vrot.slane %v112_v52, %v102_v20 }
  0x1f   :  { %v142_v42 = vrot.slane %v128_v36, %v102_v20  ;;  %v135_v43 = vrot.slane %v127_v37, %v102_v20  ;;  %v151_v45 = vrot.slane %v143_v41, %v102_v20  ;;  %v158_v55 = vrot.slane %v144_v53, %v102_v20 }
  0x21   :  { %v161_v46 = vcombine.low %v110_v39, %v142_v42  ;;  %v159_v47 = vcombine.low %v103_v40, %v135_v43  ;;  %v164_v48 = vcombine.high %v119_v44, %v151_v45  ;;  %v163_v49 = vcombine.low %v119_v44, %v151_v45 }
  0x22   :  { %v162_v50 = vcombine.high %v110_v39, %v142_v42  ;;  %v160_v51 = vcombine.high %v103_v40, %v135_v43  ;;  %v166_v56 = vcombine.high %v126_v54, %v158_v55  ;;  %v165_v57 = vcombine.low %v126_v54, %v158_v55 }
  0x23   :  { %618 = vxpose.xlu1.b32.start.end [1/1] (short) %v161_v46, 128  ;;  %167 = vxpose.xlu0.b32.start.end [1/1] (short) %v159_v47, 128 }
  0x60   :  { %843 = vxpose.xlu1.b32.start.end [1/1] (short) %v162_v50, 128  ;;  %393 = vxpose.xlu0.b32.start.end [1/1] (short) %v160_v51, 128 }
  0x9d   :  { %1293 = vxpose.xlu1.b32.start.end [1/1] (short) %v164_v48, 128  ;;  %1068 = vxpose.xlu0.b32.start.end [1/1] (short) %v163_v49, 128 }
  0xa3   :  { %v634_v58 = vpop.trf.xlu1  ;;  %v183_v59 = vpop.trf.xlu0 }
  0xa4   :  { %2379 = vmatprep.mubr.msk.f32.mxu0 %vm199_vm0, %v183_v59 }
  0xa7   :  { %v635_v60 = vpop.trf.xlu1  ;;  %v184_v61 = vpop.trf.xlu0 }
  0xa8   :  { %2380 = vmatmul.mubr.msk.f32.vlgmr.msra.gmra.mrb[0].mxu0 %vm199_vm0, %v184_v61 }
  0xa9   :  { %2430 = vmatpush3.msra.mxu0 %v2679_v11 }
  0xaa   :  { %2481 = vmatprep.subr.mxu0 %v2683_v13 }
  0xab   :  { %v636_v62 = vpop.trf.xlu1  ;;  %v185_v63 = vpop.trf.xlu0 }
  0xac   :  { %2382 = vmatprep.mubr.msk.f32.mxu0 %vm199_vm0, %v185_v63 }
  0xaf   :  { %v637_v0 = vpop.trf.xlu1  ;;  %v186_v1 = vpop.trf.xlu0 }
  0xb0   :  { %2383 = vmatmul.mubr.msk.f32.gmra.mrb[2].mxu0 %vm199_vm0, %v186_v1 }
  0xb3   :  { %v638_v2 = vpop.trf.xlu1  ;;  %v187_v3 = vpop.trf.xlu0 }
  0xb4   :  { %2385 = vmatprep.mubr.msk.f32.mxu0 %vm199_vm0, %v187_v3 }
  0xb7   :  { %v639_v4 = vpop.trf.xlu1  ;;  %v188_v5 = vpop.trf.xlu0 }
  0xb8   :  { %2386 = vmatmul.mubr.msk.f32.gmra.mrb[4].mxu0 %vm199_vm0, %v188_v5 }
  0xbb   :  { %v640_v6 = vpop.trf.xlu1  ;;  %v189_v7 = vpop.trf.xlu0 }
  0xbc   :  { %2388 = vmatprep.mubr.msk.f32.mxu0 %vm199_vm0, %v189_v7 }
  0xbf   :  { %v641_v8 = vpop.trf.xlu1  ;;  %v190_v9 = vpop.trf.xlu0 }
  0xc0   :  { %2389 = vmatmul.mubr.msk.f32.gmra.mrb[6].mxu0 %vm199_vm0, %v190_v9 }
  0xc3   :  { %v642_v10 = vpop.trf.xlu1  ;;  %v191_v11 = vpop.trf.xlu0 }
  0xc4   :  { %2391 = vmatprep.mubr.msk.f32.mxu0 %vm199_vm0, %v191_v11 }
  0xc7   :  { %v643_v15 = vpop.trf.xlu1  ;;  %v192_v16 = vpop.trf.xlu0 }
  0xc8   :  { %2392 = vmatmul.mubr.msk.f32.gmra.mrb[8].mxu0 %vm199_vm0, %v192_v16 }
  0xcb   :  { %v644_v19 = vpop.trf.xlu1  ;;  %v193_v20 = vpop.trf.xlu0 }
  0xcc   :  { %2394 = vmatprep.mubr.msk.f32.mxu0 %vm199_vm0, %v193_v20 }
  0xcf   :  { %v645_v21 = vpop.trf.xlu1  ;;  %v194_v22 = vpop.trf.xlu0 }
  0xd0   :  { %2395 = vmatmul.mubr.msk.f32.gmra.mrb[10].mxu0 %vm199_vm0, %v194_v22 }
  0xd3   :  { %v646_v23 = vpop.trf.xlu1  ;;  %v195_v24 = vpop.trf.xlu0 }
  0xd4   :  { %2397 = vmatprep.mubr.msk.f32.mxu0 %vm199_vm0, %v195_v24 }
  0xd7   :  { %v647_v25 = vpop.trf.xlu1  ;;  %v196_v26 = vpop.trf.xlu0 }
  0xd8   :  { %2398 = vmatmul.mubr.msk.f32.gmra.mrb[12].mxu0 %vm199_vm0, %v196_v26 }
  0xdb   :  { %v648_v27 = vpop.trf.xlu1  ;;  %v197_v28 = vpop.trf.xlu0  ;;  %1743 = vxpose.xlu1.b32.start.end [1/1] (short) %v166_v56, 128  ;;  %1518 = vxpose.xlu0.b32.start.end [1/1] (short) %v165_v57, 128 }
  0xdc   :  { %2400 = vmatprep.mubr.msk.f32.mxu0 %vm199_vm0, %v197_v28 }
  0xdf   :  { %v649_v29 = vpop.trf.xlu1  ;;  %v198_v30 = vpop.trf.xlu0 }
  0xe0   :  { %2401 = vmatmul.mubr.msk.f32.gmra.mrb[14].mxu0 %vm199_vm0, %v198_v30 }
  0xe1   :  { %2431 = vmatprep.mubr.msk.f32.mxu0 %vm199_vm0, %v634_v58 }
  0xe3   :  { %v2724_v31 = vpop.trf.xlu1  ;;  %v409_v32 = vpop.trf.xlu0 }
  0xe4   :  { %2405 = vmatprep.mubr.msk.f32.mxu1 %vm199_vm0, %v409_v32  ;;  %2432 = vmatmul.mubr.msk.f32.vlgmr.msra.gmra.mrb[16].mxu0 %vm199_vm0, %v635_v60 }
  0xe5   :  { %2434 = vmatprep.mubr.msk.f32.mxu0 %vm199_vm0, %v636_v62  ;;  %2482 = vmatpush3.msra.mxu0 %v2683_v13 }
  0xe6   :  { %2533 = vmatprep.subr.mxu0 %v2689_v17 }
  0xe7   :  { %v2731_v33 = vpop.trf.xlu1  ;;  %v410_v34 = vpop.trf.xlu0 }
  0xe8   :  { %2406 = vmatmul.mubr.msk.f32.vlgmr.msra.gmra.mrb[0].mxu1 %vm199_vm0, %v410_v34  ;;  %2435 = vmatmul.mubr.msk.f32.gmra.mrb[18].mxu0 %vm199_vm0, %v637_v0 }
  0xe9   :  { %2437 = vmatprep.mubr.msk.f32.mxu0 %vm199_vm0, %v638_v2  ;;  %2456 = vmatpush3.msra.mxu1 %v2681_v12 }
  0xea   :  { %2507 = vmatprep.subr.mxu1 %v2685_v14 }
  0xeb   :  { %v861_v35 = vpop.trf.xlu1  ;;  %v411_v36 = vpop.trf.xlu0 }
  0xec   :  { %2408 = vmatprep.mubr.msk.f32.mxu1 %vm199_vm0, %v411_v36  ;;  %2438 = vmatmul.mubr.msk.f32.gmra.mrb[20].mxu0 %vm199_vm0, %v639_v4 }
  0xed   :  { %2440 = vmatprep.mubr.msk.f32.mxu0 %vm199_vm0, %v640_v6 }
  0xef   :  { %v862_v13 = vpop.trf.xlu1  ;;  %v412_v37 = vpop.trf.xlu0 }
  0xf0   :  { %2409 = vmatmul.mubr.msk.f32.gmra.mrb[2].mxu1 %vm199_vm0, %v412_v37  ;;  %2441 = vmatmul.mubr.msk.f32.gmra.mrb[22].mxu0 %vm199_vm0, %v641_v8 }
  0xf1   :  { %2443 = vmatprep.mubr.msk.f32.mxu0 %vm199_vm0, %v642_v10 }
  0xf3   :  { %v863_v38 = vpop.trf.xlu1  ;;  %v413_v12 = vpop.trf.xlu0 }
  0xf4   :  { %2411 = vmatprep.mubr.msk.f32.mxu1 %vm199_vm0, %v413_v12  ;;  %2444 = vmatmul.mubr.msk.f32.gmra.mrb[24].mxu0 %vm199_vm0, %v643_v15 }
  0xf5   :  { %2446 = vmatprep.mubr.msk.f32.mxu0 %vm199_vm0, %v644_v19 }
  0xf7   :  { %v864_v39 = vpop.trf.xlu1  ;;  %v414_v40 = vpop.trf.xlu0 }
  0xf8   :  { %2412 = vmatmul.mubr.msk.f32.gmra.mrb[4].mxu1 %vm199_vm0, %v414_v40  ;;  %2447 = vmatmul.mubr.msk.f32.gmra.mrb[26].mxu0 %vm199_vm0, %v645_v21 }
  0xf9   :  { %2449 = vmatprep.mubr.msk.f32.mxu0 %vm199_vm0, %v646_v23 }
  0xfb   :  { %v865_v41 = vpop.trf.xlu1  ;;  %v415_v42 = vpop.trf.xlu0 }
  0xfc   :  { %2414 = vmatprep.mubr.msk.f32.mxu1 %vm199_vm0, %v415_v42  ;;  %2450 = vmatmul.mubr.msk.f32.gmra.mrb[28].mxu0 %vm199_vm0, %v647_v25 }
  0xfd   :  { %2452 = vmatprep.mubr.msk.f32.mxu0 %vm199_vm0, %v648_v27 }
  0xff   :  { %v866_v43 = vpop.trf.xlu1  ;;  %v416_v44 = vpop.trf.xlu0 }
 0x100   :  { %2415 = vmatmul.mubr.msk.f32.gmra.mrb[6].mxu1 %vm199_vm0, %v416_v44  ;;  %2453 = vmatmul.mubr.msk.f32.gmra.mrb[30].mxu0 %vm199_vm0, %v649_v29 }
 0x103   :  { %v867_v45 = vpop.trf.xlu1  ;;  %v417_v46 = vpop.trf.xlu0 }
 0x104   :  { %2417 = vmatprep.mubr.msk.f32.mxu1 %vm199_vm0, %v417_v46 }
 0x107   :  { %v868_v47 = vpop.trf.xlu1  ;;  %v418_v48 = vpop.trf.xlu0 }
 0x108   :  { %2418 = vmatmul.mubr.msk.f32.gmra.mrb[8].mxu1 %vm199_vm0, %v418_v48 }
 0x10b   :  { %v869_v49 = vpop.trf.xlu1  ;;  %v419_v50 = vpop.trf.xlu0 }
 0x10c   :  { %2420 = vmatprep.mubr.msk.f32.mxu1 %vm199_vm0, %v419_v50 }
 0x10f   :  { %v870_v51 = vpop.trf.xlu1  ;;  %v420_v52 = vpop.trf.xlu0 }
 0x110   :  { %2421 = vmatmul.mubr.msk.f32.gmra.mrb[10].mxu1 %vm199_vm0, %v420_v52 }
 0x113   :  { %v871_v53 = vpop.trf.xlu1  ;;  %v421_v54 = vpop.trf.xlu0 }
 0x114   :  { %2423 = vmatprep.mubr.msk.f32.mxu1 %vm199_vm0, %v421_v54 }
 0x117   :  { %v872_v55 = vpop.trf.xlu1  ;;  %v422_v56 = vpop.trf.xlu0 }
 0x118   :  { %2424 = vmatmul.mubr.msk.f32.gmra.mrb[12].mxu1 %vm199_vm0, %v422_v56 }
 0x11b   :  { %v873_v57 = vpop.trf.xlu1  ;;  %v423_v58 = vpop.trf.xlu0 }
 0x11c   :  { %2426 = vmatprep.mubr.msk.f32.mxu1 %vm199_vm0, %v423_v58 }
 0x11f   :  { %v874_v59 = vpop.trf.xlu1  ;;  %v424_v60 = vpop.trf.xlu0 }
 0x120   :  { %2427 = vmatmul.mubr.msk.f32.gmra.mrb[14].mxu1 %vm199_vm0, %v424_v60 }
 0x121   :  { %2457 = vmatprep.mubr.msk.f32.mxu1 %vm199_vm0, %v2724_v31 }
 0x123   :  { %v1309_v61 = vpop.trf.xlu1  ;;  %v1084_v62 = vpop.trf.xlu0 }
 0x124   :  { %2458 = vmatmul.mubr.msk.f32.vlgmr.msra.gmra.mrb[16].mxu1 %vm199_vm0, %v2731_v33  ;;  %2483 = vmatprep.mubr.msk.f32.mxu0 %vm199_vm0, %v1084_v62 }
 0x125   :  { %2460 = vmatprep.mubr.msk.f32.mxu1 %vm199_vm0, %v861_v35  ;;  %2508 = vmatpush3.msra.mxu1 %v2685_v14 }
 0x126   :  { %2559 = vmatprep.subr.mxu1 %v2691_v18 }
 0x127   :  { %v1310_v63 = vpop.trf.xlu1  ;;  %v1085_v0 = vpop.trf.xlu0 }
 0x128   :  { %2461 = vmatmul.mubr.msk.f32.gmra.mrb[18].mxu1 %vm199_vm0, %v862_v13  ;;  %2484 = vmatmul.mubr.msk.f32.vlgmr.msra.gmra.mrb[32].mxu0 %vm199_vm0, %v1085_v0 }
 0x129   :  { %2463 = vmatprep.mubr.msk.f32.mxu1 %vm199_vm0, %v863_v38  ;;  %2534 = vmatpush3.msra.mxu0 %v2689_v17 }
 0x12b   :  { %v1311_v1 = vpop.trf.xlu1  ;;  %v1086_v2 = vpop.trf.xlu0 }
 0x12c   :  { %2464 = vmatmul.mubr.msk.f32.gmra.mrb[20].mxu1 %vm199_vm0, %v864_v39  ;;  %2486 = vmatprep.mubr.msk.f32.mxu0 %vm199_vm0, %v1086_v2 }
 0x12d   :  { %2466 = vmatprep.mubr.msk.f32.mxu1 %vm199_vm0, %v865_v41 }
 0x12f   :  { %v1312_v14 = vpop.trf.xlu1  ;;  %v1087_v3 = vpop.trf.xlu0 }
 0x130   :  { %2467 = vmatmul.mubr.msk.f32.gmra.mrb[22].mxu1 %vm199_vm0, %v866_v43  ;;  %2487 = vmatmul.mubr.msk.f32.gmra.mrb[34].mxu0 %vm199_vm0, %v1087_v3 }
 0x131   :  { %2469 = vmatprep.mubr.msk.f32.mxu1 %vm199_vm0, %v867_v45 }
 0x133   :  { %v1313_v4 = vpop.trf.xlu1  ;;  %v1088_v5 = vpop.trf.xlu0 }
 0x134   :  { %2470 = vmatmul.mubr.msk.f32.gmra.mrb[24].mxu1 %vm199_vm0, %v868_v47  ;;  %2489 = vmatprep.mubr.msk.f32.mxu0 %vm199_vm0, %v1088_v5 }
 0x135   :  { %2472 = vmatprep.mubr.msk.f32.mxu1 %vm199_vm0, %v869_v49 }
 0x137   :  { %v1314_v17 = vpop.trf.xlu1  ;;  %v1089_v6 = vpop.trf.xlu0 }
 0x138   :  { %2473 = vmatmul.mubr.msk.f32.gmra.mrb[26].mxu1 %vm199_vm0, %v870_v51  ;;  %2490 = vmatmul.mubr.msk.f32.gmra.mrb[36].mxu0 %vm199_vm0, %v1089_v6 }
 0x139   :  { %2475 = vmatprep.mubr.msk.f32.mxu1 %vm199_vm0, %v871_v53 }
 0x13b   :  { %v1315_v7 = vpop.trf.xlu1  ;;  %v1090_v8 = vpop.trf.xlu0 }
 0x13c   :  { %2476 = vmatmul.mubr.msk.f32.gmra.mrb[28].mxu1 %vm199_vm0, %v872_v55  ;;  %2492 = vmatprep.mubr.msk.f32.mxu0 %vm199_vm0, %v1090_v8 }
 0x13d   :  { %2478 = vmatprep.mubr.msk.f32.mxu1 %vm199_vm0, %v873_v57 }
 0x13f   :  { %v1316_v9 = vpop.trf.xlu1  ;;  %v1091_v10 = vpop.trf.xlu0 }
 0x140   :  { %2479 = vmatmul.mubr.msk.f32.gmra.mrb[30].mxu1 %vm199_vm0, %v874_v59  ;;  %2493 = vmatmul.mubr.msk.f32.gmra.mrb[38].mxu0 %vm199_vm0, %v1091_v10 }
 0x141   :  { %2509 = vmatprep.mubr.msk.f32.mxu1 %vm199_vm0, %v1309_v61 }
 0x143   :  { %v1317_v11 = vpop.trf.xlu1  ;;  %v1092_v15 = vpop.trf.xlu0 }
 0x144   :  { %2495 = vmatprep.mubr.msk.f32.mxu0 %vm199_vm0, %v1092_v15  ;;  %2510 = vmatmul.mubr.msk.f32.vlgmr.msra.gmra.mrb[32].mxu1 %vm199_vm0, %v1310_v63 }
 0x145   :  { %2512 = vmatprep.mubr.msk.f32.mxu1 %vm199_vm0, %v1311_v1  ;;  %2560 = vmatpush3.msra.mxu1 %v2691_v18 }
 0x147   :  { %v1318_v16 = vpop.trf.xlu1  ;;  %v1093_v19 = vpop.trf.xlu0 }
 0x148   :  { %2496 = vmatmul.mubr.msk.f32.gmra.mrb[40].mxu0 %vm199_vm0, %v1093_v19  ;;  %2513 = vmatmul.mubr.msk.f32.gmra.mrb[34].mxu1 %vm199_vm0, %v1312_v14 }
 0x149   :  { %2515 = vmatprep.mubr.msk.f32.mxu1 %vm199_vm0, %v1313_v4 }
 0x14b   :  { %v1319_v20 = vpop.trf.xlu1  ;;  %v1094_v21 = vpop.trf.xlu0 }
 0x14c   :  { %2498 = vmatprep.mubr.msk.f32.mxu0 %vm199_vm0, %v1094_v21  ;;  %2516 = vmatmul.mubr.msk.f32.gmra.mrb[36].mxu1 %vm199_vm0, %v1314_v17 }
 0x14d   :  { %2518 = vmatprep.mubr.msk.f32.mxu1 %vm199_vm0, %v1315_v7 }
 0x14f   :  { %v1320_v22 = vpop.trf.xlu1  ;;  %v1095_v23 = vpop.trf.xlu0 }
 0x150   :  { %2499 = vmatmul.mubr.msk.f32.gmra.mrb[42].mxu0 %vm199_vm0, %v1095_v23  ;;  %2519 = vmatmul.mubr.msk.f32.gmra.mrb[38].mxu1 %vm199_vm0, %v1316_v9 }
 0x151   :  { %2521 = vmatprep.mubr.msk.f32.mxu1 %vm199_vm0, %v1317_v11 }
 0x153   :  { %v1321_v18 = vpop.trf.xlu1  ;;  %v1096_v24 = vpop.trf.xlu0 }
 0x154   :  { %2501 = vmatprep.mubr.msk.f32.mxu0 %vm199_vm0, %v1096_v24  ;;  %2522 = vmatmul.mubr.msk.f32.gmra.mrb[40].mxu1 %vm199_vm0, %v1318_v16 }
 0x155   :  { %2524 = vmatprep.mubr.msk.f32.mxu1 %vm199_vm0, %v1319_v20 }
 0x157   :  { %v1322_v25 = vpop.trf.xlu1  ;;  %v1097_v26 = vpop.trf.xlu0 }
 0x158   :  { %2502 = vmatmul.mubr.msk.f32.gmra.mrb[44].mxu0 %vm199_vm0, %v1097_v26  ;;  %2525 = vmatmul.mubr.msk.f32.gmra.mrb[42].mxu1 %vm199_vm0, %v1320_v22 }
 0x159   :  { %2527 = vmatprep.mubr.msk.f32.mxu1 %vm199_vm0, %v1321_v18 }
 0x15b   :  { %v1323_v27 = vpop.trf.xlu1  ;;  %v1098_v28 = vpop.trf.xlu0 }
 0x15c   :  { %2504 = vmatprep.mubr.msk.f32.mxu0 %vm199_vm0, %v1098_v28  ;;  %2528 = vmatmul.mubr.msk.f32.gmra.mrb[44].mxu1 %vm199_vm0, %v1322_v25 }
 0x15d   :  { %2530 = vmatprep.mubr.msk.f32.mxu1 %vm199_vm0, %v1323_v27 }
 0x15f   :  { %v1324_v29 = vpop.trf.xlu1  ;;  %v1099_v30 = vpop.trf.xlu0 }
 0x160   :  { %2505 = vmatmul.mubr.msk.f32.gmra.mrb[46].mxu0 %vm199_vm0, %v1099_v30  ;;  %2531 = vmatmul.mubr.msk.f32.gmra.mrb[46].mxu1 %vm199_vm0, %v1324_v29 }
 0x163   :  { %v1759_v31 = vpop.trf.xlu1  ;;  %v1534_v32 = vpop.trf.xlu0 }
 0x164   :  { %2535 = vmatprep.mubr.msk.f32.mxu0 %vm199_vm0, %v1534_v32  ;;  %2561 = vmatprep.mubr.msk.f32.mxu1 %vm199_vm0, %v1759_v31 }
 0x167   :  { %v1760_v33 = vpop.trf.xlu1  ;;  %v1535_v34 = vpop.trf.xlu0 }
 0x168   :  { %2536 = vmatmul.mubr.msk.f32.vlgmr.msra.gmra.mrb[48].mxu0 %vm199_vm0, %v1535_v34  ;;  %2562 = vmatmul.mubr.msk.f32.vlgmr.msra.gmra.mrb[48].mxu1 %vm199_vm0, %v1760_v33 }
 0x16b   :  { %v1761_v35 = vpop.trf.xlu1  ;;  %v1536_v36 = vpop.trf.xlu0 }
 0x16c   :  { %2538 = vmatprep.mubr.msk.f32.mxu0 %vm199_vm0, %v1536_v36  ;;  %2564 = vmatprep.mubr.msk.f32.mxu1 %vm199_vm0, %v1761_v35 }
 0x16f   :  { %v1762_v13 = vpop.trf.xlu1  ;;  %v1537_v37 = vpop.trf.xlu0 }
 0x170   :  { %2539 = vmatmul.mubr.msk.f32.gmra.mrb[50].mxu0 %vm199_vm0, %v1537_v37  ;;  %2565 = vmatmul.mubr.msk.f32.gmra.mrb[50].mxu1 %vm199_vm0, %v1762_v13 }
 0x173   :  { %v1763_v38 = vpop.trf.xlu1  ;;  %v1538_v12 = vpop.trf.xlu0 }
 0x174   :  { %2541 = vmatprep.mubr.msk.f32.mxu0 %vm199_vm0, %v1538_v12  ;;  %2567 = vmatprep.mubr.msk.f32.mxu1 %vm199_vm0, %v1763_v38 }
 0x177   :  { %v1764_v39 = vpop.trf.xlu1  ;;  %v1539_v40 = vpop.trf.xlu0 }
 0x178   :  { %2542 = vmatmul.mubr.msk.f32.gmra.mrb[52].mxu0 %vm199_vm0, %v1539_v40  ;;  %2568 = vmatmul.mubr.msk.f32.gmra.mrb[52].mxu1 %vm199_vm0, %v1764_v39 }
 0x17b   :  { %v1765_v41 = vpop.trf.xlu1  ;;  %v2381_v42 = vpop.f32.mrb[0].mxu0 }
 0x17c   :  { %1969 = vst [vmem:[#allocation5 + $0x8] sm:$0xff] %v2381_v42  ;;  %v1540_v43 = vpop.trf.xlu0  ;;  %v314_v44 = vpop.f32.mrb[1].mxu0  ;;  %2570 = vmatprep.mubr.msk.f32.mxu1 %vm199_vm0, %v1765_v41 }
 0x17d   :  { %1968 = vst [vmem:[#allocation5] sm:$0xff] %v314_v44  ;;  %2544 = vmatprep.mubr.msk.f32.mxu0 %vm199_vm0, %v1540_v43 }
 0x17f   :  { %v1766_v45 = vpop.trf.xlu1 }
 0x180   :  { %v1541_v46 = vpop.trf.xlu0  ;;  %2571 = vmatmul.mubr.msk.f32.gmra.mrb[54].mxu1 %vm199_vm0, %v1766_v45 }
 0x181   :  { %2545 = vmatmul.mubr.msk.f32.gmra.mrb[54].mxu0 %vm199_vm0, %v1541_v46 }
 0x183   :  { %v1767_v47 = vpop.trf.xlu1  ;;  %v2384_v48 = vpop.f32.mrb[2].mxu0 }
 0x184   :  { %1971 = vst [vmem:[#allocation5 + $0x18] sm:$0xff] %v2384_v48  ;;  %v1542_v49 = vpop.trf.xlu0  ;;  %v324_v50 = vpop.f32.mrb[3].mxu0  ;;  %2573 = vmatprep.mubr.msk.f32.mxu1 %vm199_vm0, %v1767_v47 }
 0x185   :  { %1970 = vst [vmem:[#allocation5 + $0x10] sm:$0xff] %v324_v50  ;;  %2547 = vmatprep.mubr.msk.f32.mxu0 %vm199_vm0, %v1542_v49 }
 0x187   :  { %v1768_v51 = vpop.trf.xlu1 }
 0x188   :  { %v1543_v52 = vpop.trf.xlu0  ;;  %2574 = vmatmul.mubr.msk.f32.gmra.mrb[56].mxu1 %vm199_vm0, %v1768_v51 }
 0x189   :  { %2548 = vmatmul.mubr.msk.f32.gmra.mrb[56].mxu0 %vm199_vm0, %v1543_v52 }
 0x18b   :  { %v1769_v53 = vpop.trf.xlu1  ;;  %v2387_v54 = vpop.f32.mrb[4].mxu0 }
 0x18c   :  { %1973 = vst [vmem:[#allocation5 + $0x28] sm:$0xff] %v2387_v54  ;;  %v1544_v55 = vpop.trf.xlu0  ;;  %v334_v56 = vpop.f32.mrb[5].mxu0  ;;  %2576 = vmatprep.mubr.msk.f32.mxu1 %vm199_vm0, %v1769_v53 }
 0x18d   :  { %1972 = vst [vmem:[#allocation5 + $0x20] sm:$0xff] %v334_v56  ;;  %2550 = vmatprep.mubr.msk.f32.mxu0 %vm199_vm0, %v1544_v55 }
 0x18f   :  { %v1770_v57 = vpop.trf.xlu1 }
 0x190   :  { %v1545_v58 = vpop.trf.xlu0  ;;  %2577 = vmatmul.mubr.msk.f32.gmra.mrb[58].mxu1 %vm199_vm0, %v1770_v57 }
 0x191   :  { %2551 = vmatmul.mubr.msk.f32.gmra.mrb[58].mxu0 %vm199_vm0, %v1545_v58 }
 0x193   :  { %v1771_v59 = vpop.trf.xlu1  ;;  %v2390_v60 = vpop.f32.mrb[6].mxu0 }
 0x194   :  { %1975 = vst [vmem:[#allocation5 + $0x38] sm:$0xff] %v2390_v60  ;;  %v1546_v61 = vpop.trf.xlu0  ;;  %v344_v62 = vpop.f32.mrb[7].mxu0  ;;  %2579 = vmatprep.mubr.msk.f32.mxu1 %vm199_vm0, %v1771_v59 }
 0x195   :  { %1974 = vst [vmem:[#allocation5 + $0x30] sm:$0xff] %v344_v62  ;;  %2553 = vmatprep.mubr.msk.f32.mxu0 %vm199_vm0, %v1546_v61 }
 0x197   :  { %v1772_v63 = vpop.trf.xlu1 }
 0x198   :  { %v1547_v0 = vpop.trf.xlu0  ;;  %2580 = vmatmul.mubr.msk.f32.gmra.mrb[60].mxu1 %vm199_vm0, %v1772_v63 }
 0x199   :  { %2554 = vmatmul.mubr.msk.f32.gmra.mrb[60].mxu0 %vm199_vm0, %v1547_v0 }
 0x19b   :  { %v1773_v1 = vpop.trf.xlu1  ;;  %v2393_v2 = vpop.f32.mrb[8].mxu0 }
 0x19c   :  { %1977 = vst [vmem:[#allocation5 + $0x48] sm:$0xff] %v2393_v2  ;;  %v1548_v14 = vpop.trf.xlu0  ;;  %v354_v3 = vpop.f32.mrb[9].mxu0  ;;  %2582 = vmatprep.mubr.msk.f32.mxu1 %vm199_vm0, %v1773_v1 }
 0x19d   :  { %1976 = vst [vmem:[#allocation5 + $0x40] sm:$0xff] %v354_v3  ;;  %2556 = vmatprep.mubr.msk.f32.mxu0 %vm199_vm0, %v1548_v14 }
 0x19f   :  { %v1774_v4 = vpop.trf.xlu1 }
 0x1a0   :  { %v1549_v5 = vpop.trf.xlu0  ;;  %2583 = vmatmul.mubr.msk.f32.gmra.mrb[62].mxu1 %vm199_vm0, %v1774_v4 }
 0x1a1   :  { %2557 = vmatmul.mubr.msk.f32.gmra.mrb[62].mxu0 %vm199_vm0, %v1549_v5 }
 0x1a3   :  { %v2396_v17 = vpop.f32.mrb[10].mxu0 }
 0x1a4   :  { %1979 = vst [vmem:[#allocation5 + $0x58] sm:$0xff] %v2396_v17  ;;  %v364_v6 = vpop.f32.mrb[11].mxu0 }
 0x1a5   :  { %1978 = vst [vmem:[#allocation5 + $0x50] sm:$0xff] %v364_v6 }
 0x1ab   :  { %v2399_v7 = vpop.f32.mrb[12].mxu0 }
 0x1ac   :  { %1981 = vst [vmem:[#allocation5 + $0x68] sm:$0xff] %v2399_v7  ;;  %v374_v8 = vpop.f32.mrb[13].mxu0 }
 0x1ad   :  { %1980 = vst [vmem:[#allocation5 + $0x60] sm:$0xff] %v374_v8 }
 0x1b3   :  { %v2402_v9 = vpop.f32.mrb[14].mxu0 }
 0x1b4   :  { %1983 = vst [vmem:[#allocation5 + $0x78] sm:$0xff] %v2402_v9  ;;  %v384_v10 = vpop.f32.mrb[15].mxu0 }
 0x1b5   :  { %1982 = vst [vmem:[#allocation5 + $0x70] sm:$0xff] %v384_v10 }
 0x1b7   :  { %v2433_v11 = vpop.f32.mrb[16].mxu0 }
 0x1b8   :  { %2001 = vst [vmem:[#allocation5 + $0x108] sm:$0xff] %v2433_v11  ;;  %v764_v15 = vpop.f32.mrb[17].mxu0 }
 0x1b9   :  { %2000 = vst [vmem:[#allocation5 + $0x100] sm:$0xff] %v764_v15 }
 0x1bb   :  { %v2407_v16 = vpop.f32.mrb[0].mxu1  ;;  %v2436_v19 = vpop.f32.mrb[18].mxu0 }
 0x1bc   :  { %1985 = vst [vmem:[#allocation5 + $0x88] sm:$0xff] %v2407_v16  ;;  %2003 = vst [vmem:[#allocation5 + $0x118] sm:$0xff] %v2436_v19  ;;  %v539_v20 = vpop.f32.mrb[1].mxu1  ;;  %v774_v21 = vpop.f32.mrb[19].mxu0 }
 0x1bd   :  { %1984 = vst [vmem:[#allocation5 + $0x80] sm:$0xff] %v539_v20  ;;  %2002 = vst [vmem:[#allocation5 + $0x110] sm:$0xff] %v774_v21 }
 0x1bf   :  { %v2439_v22 = vpop.f32.mrb[20].mxu0 }
 0x1c0   :  { %2005 = vst [vmem:[#allocation5 + $0x128] sm:$0xff] %v2439_v22  ;;  %v784_v23 = vpop.f32.mrb[21].mxu0 }
 0x1c1   :  { %2004 = vst [vmem:[#allocation5 + $0x120] sm:$0xff] %v784_v23 }
 0x1c3   :  { %v2410_v18 = vpop.f32.mrb[2].mxu1  ;;  %v2442_v24 = vpop.f32.mrb[22].mxu0 }
 0x1c4   :  { %1987 = vst [vmem:[#allocation5 + $0x98] sm:$0xff] %v2410_v18  ;;  %2007 = vst [vmem:[#allocation5 + $0x138] sm:$0xff] %v2442_v24  ;;  %v549_v25 = vpop.f32.mrb[3].mxu1  ;;  %v794_v26 = vpop.f32.mrb[23].mxu0 }
 0x1c5   :  { %1986 = vst [vmem:[#allocation5 + $0x90] sm:$0xff] %v549_v25  ;;  %2006 = vst [vmem:[#allocation5 + $0x130] sm:$0xff] %v794_v26 }
 0x1c7   :  { %v2445_v27 = vpop.f32.mrb[24].mxu0 }
 0x1c8   :  { %2009 = vst [vmem:[#allocation5 + $0x148] sm:$0xff] %v2445_v27  ;;  %v804_v28 = vpop.f32.mrb[25].mxu0 }
 0x1c9   :  { %2008 = vst [vmem:[#allocation5 + $0x140] sm:$0xff] %v804_v28 }
 0x1cb   :  { %v2413_v29 = vpop.f32.mrb[4].mxu1  ;;  %v2448_v30 = vpop.f32.mrb[26].mxu0 }
 0x1cc   :  { %1989 = vst [vmem:[#allocation5 + $0xa8] sm:$0xff] %v2413_v29  ;;  %2011 = vst [vmem:[#allocation5 + $0x158] sm:$0xff] %v2448_v30  ;;  %v559_v31 = vpop.f32.mrb[5].mxu1  ;;  %v814_v32 = vpop.f32.mrb[27].mxu0 }
 0x1cd   :  { %1988 = vst [vmem:[#allocation5 + $0xa0] sm:$0xff] %v559_v31  ;;  %2010 = vst [vmem:[#allocation5 + $0x150] sm:$0xff] %v814_v32 }
 0x1cf   :  { %v2451_v33 = vpop.f32.mrb[28].mxu0 }
 0x1d0   :  { %2013 = vst [vmem:[#allocation5 + $0x168] sm:$0xff] %v2451_v33  ;;  %v824_v34 = vpop.f32.mrb[29].mxu0 }
 0x1d1   :  { %2012 = vst [vmem:[#allocation5 + $0x160] sm:$0xff] %v824_v34 }
 0x1d3   :  { %v2416_v35 = vpop.f32.mrb[6].mxu1  ;;  %v2454_v36 = vpop.f32.mrb[30].mxu0 }
 0x1d4   :  { %1991 = vst [vmem:[#allocation5 + $0xb8] sm:$0xff] %v2416_v35  ;;  %2015 = vst [vmem:[#allocation5 + $0x178] sm:$0xff] %v2454_v36  ;;  %v569_v13 = vpop.f32.mrb[7].mxu1  ;;  %v834_v37 = vpop.f32.mrb[31].mxu0 }
 0x1d5   :  { %1990 = vst [vmem:[#allocation5 + $0xb0] sm:$0xff] %v569_v13  ;;  %2014 = vst [vmem:[#allocation5 + $0x170] sm:$0xff] %v834_v37 }
 0x1db   :  { %v2419_v38 = vpop.f32.mrb[8].mxu1 }
 0x1dc   :  { %1993 = vst [vmem:[#allocation5 + $0xc8] sm:$0xff] %v2419_v38  ;;  %v579_v12 = vpop.f32.mrb[9].mxu1 }
 0x1dd   :  { %1992 = vst [vmem:[#allocation5 + $0xc0] sm:$0xff] %v579_v12 }
 0x1e3   :  { %v2422_v39 = vpop.f32.mrb[10].mxu1 }
 0x1e4   :  { %1995 = vst [vmem:[#allocation5 + $0xd8] sm:$0xff] %v2422_v39  ;;  %v589_v40 = vpop.f32.mrb[11].mxu1 }
 0x1e5   :  { %1994 = vst [vmem:[#allocation5 + $0xd0] sm:$0xff] %v589_v40 }
 0x1eb   :  { %v2425_v41 = vpop.f32.mrb[12].mxu1 }
 0x1ec   :  { %1997 = vst [vmem:[#allocation5 + $0xe8] sm:$0xff] %v2425_v41  ;;  %v599_v42 = vpop.f32.mrb[13].mxu1 }
 0x1ed   :  { %1996 = vst [vmem:[#allocation5 + $0xe0] sm:$0xff] %v599_v42 }
 0x1f3   :  { %v2428_v43 = vpop.f32.mrb[14].mxu1 }
 0x1f4   :  { %1999 = vst [vmem:[#allocation5 + $0xf8] sm:$0xff] %v2428_v43  ;;  %v609_v44 = vpop.f32.mrb[15].mxu1 }
 0x1f5   :  { %1998 = vst [vmem:[#allocation5 + $0xf0] sm:$0xff] %v609_v44 }
 0x1f7   :  { %v2459_v45 = vpop.f32.mrb[16].mxu1 }
 0x1f8   :  { %2017 = vst [vmem:[#allocation5 + $0x188] sm:$0xff] %v2459_v45  ;;  %v989_v46 = vpop.f32.mrb[17].mxu1 }
 0x1f9   :  { %2016 = vst [vmem:[#allocation5 + $0x180] sm:$0xff] %v989_v46 }
 0x1fb   :  { %v2462_v47 = vpop.f32.mrb[18].mxu1  ;;  %v2485_v48 = vpop.f32.mrb[32].mxu0 }
 0x1fc   :  { %2019 = vst [vmem:[#allocation5 + $0x198] sm:$0xff] %v2462_v47  ;;  %2033 = vst [vmem:[#allocation5 + $0x208] sm:$0xff] %v2485_v48  ;;  %v999_v49 = vpop.f32.mrb[19].mxu1  ;;  %v1214_v50 = vpop.f32.mrb[33].mxu0 }
 0x1fd   :  { %2018 = vst [vmem:[#allocation5 + $0x190] sm:$0xff] %v999_v49  ;;  %2032 = vst [vmem:[#allocation5 + $0x200] sm:$0xff] %v1214_v50 }
 0x1ff   :  { %v2465_v51 = vpop.f32.mrb[20].mxu1 }
 0x200   :  { %2021 = vst [vmem:[#allocation5 + $0x1a8] sm:$0xff] %v2465_v51  ;;  %v1009_v52 = vpop.f32.mrb[21].mxu1 }
 0x201   :  { %2020 = vst [vmem:[#allocation5 + $0x1a0] sm:$0xff] %v1009_v52 }
 0x203   :  { %v2468_v53 = vpop.f32.mrb[22].mxu1  ;;  %v2488_v54 = vpop.f32.mrb[34].mxu0 }
 0x204   :  { %2023 = vst [vmem:[#allocation5 + $0x1b8] sm:$0xff] %v2468_v53  ;;  %2035 = vst [vmem:[#allocation5 + $0x218] sm:$0xff] %v2488_v54  ;;  %v1019_v55 = vpop.f32.mrb[23].mxu1  ;;  %v1224_v56 = vpop.f32.mrb[35].mxu0 }
 0x205   :  { %2022 = vst [vmem:[#allocation5 + $0x1b0] sm:$0xff] %v1019_v55  ;;  %2034 = vst [vmem:[#allocation5 + $0x210] sm:$0xff] %v1224_v56 }
 0x207   :  { %v2471_v57 = vpop.f32.mrb[24].mxu1 }
 0x208   :  { %2025 = vst [vmem:[#allocation5 + $0x1c8] sm:$0xff] %v2471_v57  ;;  %v1029_v58 = vpop.f32.mrb[25].mxu1 }
 0x209   :  { %2024 = vst [vmem:[#allocation5 + $0x1c0] sm:$0xff] %v1029_v58 }
 0x20b   :  { %v2474_v59 = vpop.f32.mrb[26].mxu1  ;;  %v2491_v60 = vpop.f32.mrb[36].mxu0 }
 0x20c   :  { %2027 = vst [vmem:[#allocation5 + $0x1d8] sm:$0xff] %v2474_v59  ;;  %2037 = vst [vmem:[#allocation5 + $0x228] sm:$0xff] %v2491_v60  ;;  %v1039_v61 = vpop.f32.mrb[27].mxu1  ;;  %v1234_v62 = vpop.f32.mrb[37].mxu0 }
 0x20d   :  { %2026 = vst [vmem:[#allocation5 + $0x1d0] sm:$0xff] %v1039_v61  ;;  %2036 = vst [vmem:[#allocation5 + $0x220] sm:$0xff] %v1234_v62 }
 0x20f   :  { %v2477_v63 = vpop.f32.mrb[28].mxu1 }
 0x210   :  { %2029 = vst [vmem:[#allocation5 + $0x1e8] sm:$0xff] %v2477_v63  ;;  %v1049_v0 = vpop.f32.mrb[29].mxu1 }
 0x211   :  { %2028 = vst [vmem:[#allocation5 + $0x1e0] sm:$0xff] %v1049_v0 }
 0x213   :  { %v2480_v1 = vpop.f32.mrb[30].mxu1  ;;  %v2494_v2 = vpop.f32.mrb[38].mxu0 }
 0x214   :  { %2031 = vst [vmem:[#allocation5 + $0x1f8] sm:$0xff] %v2480_v1  ;;  %2039 = vst [vmem:[#allocation5 + $0x238] sm:$0xff] %v2494_v2  ;;  %v1059_v14 = vpop.f32.mrb[31].mxu1  ;;  %v1244_v3 = vpop.f32.mrb[39].mxu0 }
 0x215   :  { %2030 = vst [vmem:[#allocation5 + $0x1f0] sm:$0xff] %v1059_v14  ;;  %2038 = vst [vmem:[#allocation5 + $0x230] sm:$0xff] %v1244_v3 }
 0x217   :  { %v2511_v4 = vpop.f32.mrb[32].mxu1 }
 0x218   :  { %2049 = vst [vmem:[#allocation5 + $0x288] sm:$0xff] %v2511_v4  ;;  %v1439_v5 = vpop.f32.mrb[33].mxu1 }
 0x219   :  { %2048 = vst [vmem:[#allocation5 + $0x280] sm:$0xff] %v1439_v5 }
 0x21b   :  { %v2497_v17 = vpop.f32.mrb[40].mxu0  ;;  %v2514_v6 = vpop.f32.mrb[34].mxu1 }
 0x21c   :  { %2041 = vst [vmem:[#allocation5 + $0x248] sm:$0xff] %v2497_v17  ;;  %2051 = vst [vmem:[#allocation5 + $0x298] sm:$0xff] %v2514_v6  ;;  %v1254_v7 = vpop.f32.mrb[41].mxu0  ;;  %v1449_v8 = vpop.f32.mrb[35].mxu1 }
 0x21d   :  { %2040 = vst [vmem:[#allocation5 + $0x240] sm:$0xff] %v1254_v7  ;;  %2050 = vst [vmem:[#allocation5 + $0x290] sm:$0xff] %v1449_v8 }
 0x21f   :  { %v2517_v9 = vpop.f32.mrb[36].mxu1 }
 0x220   :  { %2053 = vst [vmem:[#allocation5 + $0x2a8] sm:$0xff] %v2517_v9  ;;  %v1459_v10 = vpop.f32.mrb[37].mxu1 }
 0x221   :  { %2052 = vst [vmem:[#allocation5 + $0x2a0] sm:$0xff] %v1459_v10 }
 0x223   :  { %v2500_v11 = vpop.f32.mrb[42].mxu0  ;;  %v2520_v15 = vpop.f32.mrb[38].mxu1 }
 0x224   :  { %2043 = vst [vmem:[#allocation5 + $0x258] sm:$0xff] %v2500_v11  ;;  %2055 = vst [vmem:[#allocation5 + $0x2b8] sm:$0xff] %v2520_v15  ;;  %v1264_v16 = vpop.f32.mrb[43].mxu0  ;;  %v1469_v19 = vpop.f32.mrb[39].mxu1 }
 0x225   :  { %2042 = vst [vmem:[#allocation5 + $0x250] sm:$0xff] %v1264_v16  ;;  %2054 = vst [vmem:[#allocation5 + $0x2b0] sm:$0xff] %v1469_v19 }
 0x227   :  { %v2523_v20 = vpop.f32.mrb[40].mxu1 }
 0x228   :  { %2057 = vst [vmem:[#allocation5 + $0x2c8] sm:$0xff] %v2523_v20  ;;  %v1479_v21 = vpop.f32.mrb[41].mxu1 }
 0x229   :  { %2056 = vst [vmem:[#allocation5 + $0x2c0] sm:$0xff] %v1479_v21 }
 0x22b   :  { %v2503_v22 = vpop.f32.mrb[44].mxu0  ;;  %v2526_v23 = vpop.f32.mrb[42].mxu1 }
 0x22c   :  { %2045 = vst [vmem:[#allocation5 + $0x268] sm:$0xff] %v2503_v22  ;;  %2059 = vst [vmem:[#allocation5 + $0x2d8] sm:$0xff] %v2526_v23  ;;  %v1274_v18 = vpop.f32.mrb[45].mxu0  ;;  %v1489_v24 = vpop.f32.mrb[43].mxu1 }
 0x22d   :  { %2044 = vst [vmem:[#allocation5 + $0x260] sm:$0xff] %v1274_v18  ;;  %2058 = vst [vmem:[#allocation5 + $0x2d0] sm:$0xff] %v1489_v24 }
 0x22f   :  { %v2529_v25 = vpop.f32.mrb[44].mxu1 }
 0x230   :  { %2061 = vst [vmem:[#allocation5 + $0x2e8] sm:$0xff] %v2529_v25  ;;  %v1499_v26 = vpop.f32.mrb[45].mxu1 }
 0x231   :  { %2060 = vst [vmem:[#allocation5 + $0x2e0] sm:$0xff] %v1499_v26 }
 0x233   :  { %v2506_v27 = vpop.f32.mrb[46].mxu0  ;;  %v2532_v28 = vpop.f32.mrb[46].mxu1 }
 0x234   :  { %2047 = vst [vmem:[#allocation5 + $0x278] sm:$0xff] %v2506_v27  ;;  %2063 = vst [vmem:[#allocation5 + $0x2f8] sm:$0xff] %v2532_v28  ;;  %v1284_v29 = vpop.f32.mrb[47].mxu0  ;;  %v1509_v30 = vpop.f32.mrb[47].mxu1 }
 0x235   :  { %2046 = vst [vmem:[#allocation5 + $0x270] sm:$0xff] %v1284_v29  ;;  %2062 = vst [vmem:[#allocation5 + $0x2f0] sm:$0xff] %v1509_v30 }
 0x23b   :  { %v2537_v31 = vpop.f32.mrb[48].mxu0  ;;  %v2563_v32 = vpop.f32.mrb[48].mxu1 }
 0x23c   :  { %2065 = vst [vmem:[#allocation5 + $0x308] sm:$0xff] %v2537_v31  ;;  %2081 = vst [vmem:[#allocation5 + $0x388] sm:$0xff] %v2563_v32  ;;  %v1664_v33 = vpop.f32.mrb[49].mxu0  ;;  %v1889_v34 = vpop.f32.mrb[49].mxu1 }
 0x23d   :  { %2064 = vst [vmem:[#allocation5 + $0x300] sm:$0xff] %v1664_v33  ;;  %2080 = vst [vmem:[#allocation5 + $0x380] sm:$0xff] %v1889_v34 }
 0x243   :  { %v2540_v35 = vpop.f32.mrb[50].mxu0  ;;  %v2566_v36 = vpop.f32.mrb[50].mxu1 }
 0x244   :  { %2067 = vst [vmem:[#allocation5 + $0x318] sm:$0xff] %v2540_v35  ;;  %2083 = vst [vmem:[#allocation5 + $0x398] sm:$0xff] %v2566_v36  ;;  %v1674_v13 = vpop.f32.mrb[51].mxu0  ;;  %v1899_v37 = vpop.f32.mrb[51].mxu1 }
 0x245   :  { %2066 = vst [vmem:[#allocation5 + $0x310] sm:$0xff] %v1674_v13  ;;  %2082 = vst [vmem:[#allocation5 + $0x390] sm:$0xff] %v1899_v37 }
 0x24b   :  { %v2543_v38 = vpop.f32.mrb[52].mxu0  ;;  %v2569_v12 = vpop.f32.mrb[52].mxu1 }
 0x24c   :  { %2069 = vst [vmem:[#allocation5 + $0x328] sm:$0xff] %v2543_v38  ;;  %2085 = vst [vmem:[#allocation5 + $0x3a8] sm:$0xff] %v2569_v12  ;;  %v1684_v39 = vpop.f32.mrb[53].mxu0  ;;  %v1909_v40 = vpop.f32.mrb[53].mxu1 }
 0x24d   :  { %2068 = vst [vmem:[#allocation5 + $0x320] sm:$0xff] %v1684_v39  ;;  %2084 = vst [vmem:[#allocation5 + $0x3a0] sm:$0xff] %v1909_v40 }
 0x253   :  { %v2572_v41 = vpop.f32.mrb[54].mxu1 }
 0x254   :  { %v2546_v42 = vpop.f32.mrb[54].mxu0  ;;  %2087 = vst [vmem:[#allocation5 + $0x3b8] sm:$0xff] %v2572_v41  ;;  %v1919_v43 = vpop.f32.mrb[55].mxu1 }
 0x255   :  { %2071 = vst [vmem:[#allocation5 + $0x338] sm:$0xff] %v2546_v42  ;;  %v1694_v44 = vpop.f32.mrb[55].mxu0  ;;  %2086 = vst [vmem:[#allocation5 + $0x3b0] sm:$0xff] %v1919_v43 }
 0x256   :  { %2070 = vst [vmem:[#allocation5 + $0x330] sm:$0xff] %v1694_v44 }
 0x25b   :  { %v2575_v45 = vpop.f32.mrb[56].mxu1 }
 0x25c   :  { %v2549_v46 = vpop.f32.mrb[56].mxu0  ;;  %2089 = vst [vmem:[#allocation5 + $0x3c8] sm:$0xff] %v2575_v45  ;;  %v1929_v47 = vpop.f32.mrb[57].mxu1 }
 0x25d   :  { %2073 = vst [vmem:[#allocation5 + $0x348] sm:$0xff] %v2549_v46  ;;  %v1704_v48 = vpop.f32.mrb[57].mxu0  ;;  %2088 = vst [vmem:[#allocation5 + $0x3c0] sm:$0xff] %v1929_v47 }
 0x25e   :  { %2072 = vst [vmem:[#allocation5 + $0x340] sm:$0xff] %v1704_v48 }
 0x263   :  { %v2578_v49 = vpop.f32.mrb[58].mxu1 }
 0x264   :  { %v2552_v50 = vpop.f32.mrb[58].mxu0  ;;  %2091 = vst [vmem:[#allocation5 + $0x3d8] sm:$0xff] %v2578_v49  ;;  %v1939_v51 = vpop.f32.mrb[59].mxu1 }
 0x265   :  { %2075 = vst [vmem:[#allocation5 + $0x358] sm:$0xff] %v2552_v50  ;;  %v1714_v52 = vpop.f32.mrb[59].mxu0  ;;  %2090 = vst [vmem:[#allocation5 + $0x3d0] sm:$0xff] %v1939_v51 }
 0x266   :  { %2074 = vst [vmem:[#allocation5 + $0x350] sm:$0xff] %v1714_v52 }
 0x26b   :  { %v2581_v53 = vpop.f32.mrb[60].mxu1 }
 0x26c   :  { %v2555_v54 = vpop.f32.mrb[60].mxu0  ;;  %2093 = vst [vmem:[#allocation5 + $0x3e8] sm:$0xff] %v2581_v53  ;;  %v1949_v55 = vpop.f32.mrb[61].mxu1 }
 0x26d   :  { %2077 = vst [vmem:[#allocation5 + $0x368] sm:$0xff] %v2555_v54  ;;  %v1724_v56 = vpop.f32.mrb[61].mxu0  ;;  %2092 = vst [vmem:[#allocation5 + $0x3e0] sm:$0xff] %v1949_v55 }
 0x26e   :  { %2076 = vst [vmem:[#allocation5 + $0x360] sm:$0xff] %v1724_v56 }
 0x273   :  { %v2584_v57 = vpop.f32.mrb[62].mxu1 }
 0x274   :  { %v2558_v58 = vpop.f32.mrb[62].mxu0  ;;  %2095 = vst [vmem:[#allocation5 + $0x3f8] sm:$0xff] %v2584_v57  ;;  %v1959_v59 = vpop.f32.mrb[63].mxu1 }
 0x275   :  { %2079 = vst [vmem:[#allocation5 + $0x378] sm:$0xff] %v2558_v58  ;;  %v1734_v60 = vpop.f32.mrb[63].mxu0  ;;  %2094 = vst [vmem:[#allocation5 + $0x3f0] sm:$0xff] %v1959_v59 }
 0x276   :  { %2078 = vst [vmem:[#allocation5 + $0x370] sm:$0xff] %v1734_v60 }
 0x277   :  { %2633 = shalt.err (!%p2630_p12)
}
 0x278   :  { %s2634_s24 = scalar_lea.hbm %s2865_s1, 16384 }
 0x279   :  { %p2635_p13 = scmp.ne.s32.totalorder %s2865_s1, %s2634_s24  ;;  %p2638_p0 = scmp.lt.u32.totalorder %s2634_s24, %s2865_s1 }
 0x27b   :  { %p2640_p1 = pnand %p2638_p0, %p2635_p13 }
 0x27d   :  { %2643 = shalt.err (!%p2640_p1)
}
 0x27e   :  { %2107 = dma.vmem_to_hbm [thread:$0]  %s2102_s20, 16384, %s2865_s1, [#allocation4], %s2649_s16, %s2649_s16, %s2650_s17  }
 0x27f   :  { %2646 = dma.done.wait [#allocation4], 16384  }
 0x280   :  { %2647 = vsyncadd [#allocation4], 4294950912 }
 0x281   :  { %2111 = vsyncpa [#allocation3], 1 }
 0x282   :  { %2112 = vsyncpa [#allocation4], 1 }

</bundles_post_ra>
